<compile_context>
chip_gen: v6e
topology: v6e:2x2x1
jax: 0.10.0
libtpu: 0.0.40
codegen_flags: <defaults>
</compile_context>

<pallas_src>
import functools

import jax
import jax.numpy as jnp
import numpy as np
from jax.experimental import pallas as pl
from jax.experimental.pallas import tpu as pltpu

_LANE_TILE = 4096          # max lane-axis tile (multiple of 128)
_VMEM_LIMIT = 32 * 1024 * 1024   # stay under v7x's 32 MiB scoped default


def _round_up(a, b):
    return -(-a // b) * b


def _lane_pad(x, value=0.0):
    """Pad the lane (last) axis of a 2-D array to a tile multiple.

    Tile = min(4096, Mp) for DMA efficiency, but capped so the grid has >= 2
    parallel steps when possible (v7x megacore).  Returns (padded_x, tile)."""
    m = x.shape[-1]
    mp = _round_up(m, 128)
    tm = min(_LANE_TILE, mp)
    if mp // tm < 2 and mp > 128:           # keep >= 2 grid steps if we can
        tm = _round_up(-(-mp // 2), 128)
    mp = _round_up(mp, tm)
    if mp != m:
        x = jnp.pad(x, ((0, 0), (0, mp - m)), constant_values=value)
    return x, tm


def _compiler_params():
    return pltpu.CompilerParams(dimension_semantics=("parallel",),
                                vmem_limit_bytes=_VMEM_LIMIT)


def _im2col_cm(x_cm, kh, kw):
    """Channel-major im2col: (Cin, N, H, W) -> (Cin*kh*kw, N*Ho*Wo).

    Row order (cin, u, v) matches w.reshape(Cout, Cin*kh*kw); no transposes."""
    Cin, N, H, W = x_cm.shape
    Ho, Wo = H - kh + 1, W - kw + 1
    taps = [x_cm[:, :, u:u + Ho, v:v + Wo] for u in range(kh) for v in range(kw)]
    p = jnp.stack(taps, axis=1).reshape(Cin * kh * kw, N * Ho * Wo)
    return p.astype(jnp.bfloat16), (N, Ho, Wo)


# ----------------------------- Pallas kernels -----------------------------

def _conv_mm_prelu_kernel(w_ref, p_ref, b_ref, a_ref, o_ref):
    # w: (Cout, K) bf16, p: (K, TM) bf16, b/a: (Cout, 1) f32 -> o: (Cout, TM) bf16
    y = jnp.dot(w_ref[...], p_ref[...], preferred_element_type=jnp.float32)
    y = y + b_ref[...]
    y = jnp.where(y > 0, y, y * a_ref[...])          # per-channel PReLU (f32)
    o_ref[...] = y.astype(o_ref.dtype)               # bf16 activation store


def _conv3_heads_kernel(w3_ref, p_ref, b3_ref, a3_ref, wh_ref, bh_ref, o_ref):
    # Fused conv3 + PReLU3 + conv4_1 + Softmax(dim=1) + conv4_2.
    # conv3: (32, K) @ (K, TM) + bias + PReLU, all in f32.
    h = jnp.dot(w3_ref[...], p_ref[...], preferred_element_type=jnp.float32)
    h = h + b3_ref[...]
    h = jnp.where(h > 0, h, h * a3_ref[...])
    # heads: (8, 32) @ (32, TM); rows 0-1 = conv4_1, 2-5 = conv4_2, 6-7 = zero pad.
    y = jnp.dot(wh_ref[...], h.astype(jnp.bfloat16),
                preferred_element_type=jnp.float32)
    y = y + bh_ref[...]
    # 2-class softmax over rows 0-1  ==  sigmoid of the logit difference.
    p1 = 1.0 / (1.0 + jnp.exp(y[0:1, :] - y[1:2, :]))
    p0 = 1.0 - p1
    # single packed (8, TM) store: unmasked full-sublane vst.
    o_ref[...] = jnp.concatenate([p0, p1, y[2:8, :]], axis=0)


# ----------------------------- layer wrappers -----------------------------

def conv2d_bias_prelu(x_cm, w, b, alpha):
    """'valid' conv, stride 1, on a channel-major activation; fused bias+PReLU.

    Lowered to a lane-dense (Cout, K) @ (K, M) Pallas MXU matmul with
    M = N*Ho*Wo on the lane axis, tiled over M with a parallel grid.
    Returns a channel-major bf16 activation (Cout, N, Ho, Wo)."""
    Cout, Cin, kh, kw = w.shape
    p, (N, Ho, Wo) = _im2col_cm(x_cm, kh, kw)
    K, M = Cin * kh * kw, N * Ho * Wo
    p, tm = _lane_pad(p)
    Mp = p.shape[-1]

    out = pl.pallas_call(
        _conv_mm_prelu_kernel,
        out_shape=jax.ShapeDtypeStruct((Cout, Mp), jnp.bfloat16),
        grid=(Mp // tm,),
        in_specs=[
            pl.BlockSpec((Cout, K), lambda i: (0, 0)),   # weights (resident)
            pl.BlockSpec((K, tm), lambda i: (0, i)),     # patch tile (lane-dense)
            pl.BlockSpec((Cout, 1), lambda i: (0, 0)),   # bias
            pl.BlockSpec((Cout, 1), lambda i: (0, 0)),   # PReLU alpha
        ],
        out_specs=pl.BlockSpec((Cout, tm), lambda i: (0, i)),
        compiler_params=_compiler_params(),
        cost_estimate=pl.CostEstimate(
            flops=2 * Cout * K * Mp, transcendentals=0,
            bytes_accessed=2 * (Cout * K + K * Mp + Cout * Mp) + 8 * Cout),
    )(w.reshape(Cout, K).astype(jnp.bfloat16),
      p,
      b.reshape(Cout, 1).astype(jnp.float32),
      alpha.reshape(Cout, 1).astype(jnp.float32))

    return out[:, :M].reshape(Cout, N, Ho, Wo)


def maxpool2d_ceil(x_cm, k, s):
    """MaxPool2d(k, s, ceil_mode=True) on a channel-major activation.

    Pure XLA elementwise max over the k*k shifted window slices (fuses with
    the slicing; no materialized window stack, no extra launch)."""
    C, N, H, W = x_cm.shape
    Ho = -(-(H - k) // s) + 1
    Wo = -(-(W - k) // s) + 1
    ph = (Ho - 1) * s + k - H
    pw = (Wo - 1) * s + k - W
    # ceil_mode guarantees no window falls entirely in padding for these shapes.
    assert ph < k and pw < k
    if ph or pw:
        x_cm = jnp.pad(x_cm, ((0, 0), (0, 0), (0, ph), (0, pw)),
                       constant_values=-jnp.inf)
    wins = [x_cm[:, :, u:u + s * Ho:s, v:v + s * Wo:s]
            for u in range(k) for v in range(k)]
    return functools.reduce(jnp.maximum, wins)


def conv3_heads(x_cm, w3, b3, a3, w41, b41, w42, b42):
    """Fused conv3 + PReLU3 + conv4_1 + Softmax(dim=1) + conv4_2.

    Returns (b, a) in NCHW like the PyTorch module: bbox regression, probs."""
    Cin, _, _, _ = x_cm.shape
    Cout = w3.shape[0]                                   # 32
    kh, kw = w3.shape[2], w3.shape[3]
    p, (N, Ho, Wo) = _im2col_cm(x_cm, kh, kw)
    K, M = Cin * kh * kw, N * Ho * Wo
    p, tm = _lane_pad(p)
    Mp = p.shape[-1]

    # pack the two 1x1 heads into one (8, 32) weight (rows 6-7 zero pad).
    wh = jnp.concatenate([w41.reshape(2, Cout), w42.reshape(4, Cout),
                          jnp.zeros((2, Cout), jnp.float32)], axis=0)
    bh = jnp.concatenate([b41, b42, jnp.zeros((2,), jnp.float32)]).reshape(8, 1)

    out = pl.pallas_call(
        _conv3_heads_kernel,
        out_shape=jax.ShapeDtypeStruct((8, Mp), jnp.float32),
        grid=(Mp // tm,),
        in_specs=[
            pl.BlockSpec((Cout, K), lambda i: (0, 0)),   # conv3 weights
            pl.BlockSpec((K, tm), lambda i: (0, i)),     # patch tile
            pl.BlockSpec((Cout, 1), lambda i: (0, 0)),   # conv3 bias
            pl.BlockSpec((Cout, 1), lambda i: (0, 0)),   # PReLU3 alpha
            pl.BlockSpec((8, Cout), lambda i: (0, 0)),   # packed head weights
            pl.BlockSpec((8, 1), lambda i: (0, 0)),      # packed head bias
        ],
        out_specs=pl.BlockSpec((8, tm), lambda i: (0, i)),
        compiler_params=_compiler_params(),
        cost_estimate=pl.CostEstimate(
            flops=2 * (Cout * K + 8 * Cout) * Mp, transcendentals=Mp,
            bytes_accessed=2 * (Cout * K + K * Mp + 8 * Cout) + 4 * 8 * Mp),
    )(w3.reshape(Cout, K).astype(jnp.bfloat16),
      p,
      b3.reshape(Cout, 1).astype(jnp.float32),
      a3.reshape(Cout, 1).astype(jnp.float32),
      wh.astype(jnp.bfloat16),
      bh.astype(jnp.float32))

    a = out[0:2, :M].reshape(2, N, Ho, Wo).transpose(1, 0, 2, 3)   # probs
    b = out[2:6, :M].reshape(4, N, Ho, Wo).transpose(1, 0, 2, 3)   # bbox reg
    return b, a


# ----------------------------- PNet forward -----------------------------

@jax.jit
def pnet_forward(params, x):
    # single NCHW -> channel-major transpose of the tiny 3-channel input;
    # everything downstream stays channel-major bf16 until the final heads.
    h = jnp.transpose(x.astype(jnp.float32), (1, 0, 2, 3)).astype(jnp.bfloat16)
    h = conv2d_bias_prelu(h, *params['conv1'], params['prelu1'])
    h = maxpool2d_ceil(h, 2, 2)
    h = conv2d_bias_prelu(h, *params['conv2'], params['prelu2'])
    b, a = conv3_heads(h, *params['conv3'], params['prelu3'],
                       *params['conv4_1'], *params['conv4_2'])
    return b, a


def init_pnet_params(key):
    keys = iter(jax.random.split(key, 16))

    def conv(cout, cin, k):
        w = jax.random.normal(next(keys), (cout, cin, k, k), jnp.float32) * 0.05
        b = jax.random.normal(next(keys), (cout,), jnp.float32) * 0.05
        return w, b

    prelu = lambda c: jnp.full((c,), 0.25, jnp.float32)   # nn.PReLU default init

    # TODO(synk): loading the pretrained `pnet.pt` torch checkpoint is file/torch
    # I/O with no in-script equivalent; random weights with matching shapes instead.
    return dict(conv1=conv(10, 3, 3), prelu1=prelu(10),
                conv2=conv(16, 10, 3), prelu2=prelu(16),
                conv3=conv(32, 16, 3), prelu3=prelu(32),
                conv4_1=conv(2, 32, 1), conv4_2=conv(4, 32, 1))


class PNetPallas:
    """Pallas/TPU implementation of facenet_pytorch MTCNN PNet.forward."""

    def __init__(self, key):
        self.params = init_pnet_params(key)

    def __call__(self, x):
        b, a = pnet_forward(self.params, x)
        # torch module returns (b.cpu().numpy(), a.cpu().numpy())
        return np.asarray(b), np.asarray(a)


# ----------------------------- main -----------------------------

if __name__ == "__main__":
    key = jax.random.PRNGKey(0)
    pkey, xkey = jax.random.split(key)
    net = PNetPallas(pkey)
    x = jax.random.normal(xkey, (2, 3, 32, 32), jnp.float32)

    b_dev, a_dev = pnet_forward(net.params, x)
    jax.block_until_ready((b_dev, a_dev))

    b, a = net(x)
    assert b.shape == (2, 4, 11, 11) and a.shape == (2, 2, 11, 11)
    assert b.dtype == np.float32 and a.dtype == np.float32
    assert np.allclose(a.sum(axis=1), 1.0, atol=1e-3)   # channel softmax sums to 1
    assert np.all((a >= 0.0) & (a <= 1.0))
    print("KERNEL_OK")
</pallas_src>

<mosaic_0001>
module attributes {stable_mosaic.version = 11 : i64} {
  func.func @_conv_mm_prelu_kernel(%arg0: i32, %arg1: memref<10x27xbf16, #tpu.memory_space<vmem>>, %arg2: memref<27x1024xbf16, #tpu.memory_space<vmem>>, %arg3: memref<10x1xf32, #tpu.memory_space<vmem>>, %arg4: memref<10x1xf32, #tpu.memory_space<vmem>>, %arg5: memref<10x1024xbf16, #tpu.memory_space<vmem>>) attributes {dimension_semantics = [#tpu.dimension_semantics<parallel>], iteration_bounds = array<i64: 2>, scalar_prefetch = 0 : i64, scratch_operands = 0 : i64, tpu.core_type = #tpu.core_type<tc>, window_params = [{pipeline_mode = #tpu.pipeline_mode<synchronous>, transform_indices = @transform_0, window_bounds = array<i64: 10, 27>}, {transform_indices = @transform_1, window_bounds = array<i64: 27, 1024>}, {pipeline_mode = #tpu.pipeline_mode<synchronous>, transform_indices = @transform_2, window_bounds = array<i64: 10, 1>}, {pipeline_mode = #tpu.pipeline_mode<synchronous>, transform_indices = @transform_3, window_bounds = array<i64: 10, 1>}, {transform_indices = @transform_4, window_bounds = array<i64: 10, 1024>}]} {
    %c0 = arith.constant 0 : index
    %c0_0 = arith.constant 0 : index
    %0 = vector.load %arg1[%c0, %c0_0] : memref<10x27xbf16, #tpu.memory_space<vmem>>, vector<10x27xbf16>
    %c0_1 = arith.constant 0 : index
    %c0_2 = arith.constant 0 : index
    %1 = vector.load %arg2[%c0_1, %c0_2] : memref<27x1024xbf16, #tpu.memory_space<vmem>>, vector<27x1024xbf16>
    %cst = arith.constant dense<0.000000e+00> : vector<10x1024xf32>
    %2 = tpu.matmul %0, %1, %cst {dimension_numbers = #tpu.dot_dimension_numbers<[1], [0], [0], [1], [0, 0, 1, 1], [], []>} : vector<10x27xbf16>, vector<27x1024xbf16>, vector<10x1024xf32> -> vector<10x1024xf32>
    %c0_3 = arith.constant 0 : index
    %c0_4 = arith.constant 0 : index
    %3 = vector.load %arg3[%c0_3, %c0_4] : memref<10x1xf32, #tpu.memory_space<vmem>>, vector<10x1xf32>
    %4 = vector.broadcast %3 : vector<10x1xf32> to vector<10x1024xf32>
    %5 = arith.addf %2, %4 : vector<10x1024xf32>
    %cst_5 = arith.constant 0.000000e+00 : f32
    %6 = vector.broadcast %cst_5 : f32 to vector<10x1024xf32>
    %7 = arith.cmpf ogt, %5, %6 : vector<10x1024xf32>
    %c0_6 = arith.constant 0 : index
    %c0_7 = arith.constant 0 : index
    %8 = vector.load %arg4[%c0_6, %c0_7] : memref<10x1xf32, #tpu.memory_space<vmem>>, vector<10x1xf32>
    %9 = vector.broadcast %8 : vector<10x1xf32> to vector<10x1024xf32>
    %10 = arith.mulf %5, %9 : vector<10x1024xf32>
    %11 = arith.select %7, %5, %10 : vector<10x1024xi1>, vector<10x1024xf32>
    %12 = arith.truncf %11 : vector<10x1024xf32> to vector<10x1024xbf16>
    %c0_8 = arith.constant 0 : index
    %c0_9 = arith.constant 0 : index
    %13 = vector.load %arg5[%c0_8, %c0_9] : memref<10x1024xbf16, #tpu.memory_space<vmem>>, vector<10x1024xbf16>
    tpu.vector_store %arg5[%c0_8, %c0_9], %12 {strides = array<i32>} : memref<10x1024xbf16, #tpu.memory_space<vmem>>, vector<10x1024xbf16>,
    return
  }
  func.func @transform_0(%arg0: i32) -> (i32, i32) {
    %c0_i32 = arith.constant 0 : i32
    %c0_i32_0 = arith.constant 0 : i32
    %c0_i32_1 = arith.constant 0 : i32
    return %c0_i32, %c0_i32_0 : i32, i32
  }
  func.func @transform_1(%arg0: i32) -> (i32, i32) {
    %c0_i32 = arith.constant 0 : i32
    %c0_i32_0 = arith.constant 0 : i32
    return %c0_i32, %arg0 : i32, i32
  }
  func.func @transform_2(%arg0: i32) -> (i32, i32) {
    %c0_i32 = arith.constant 0 : i32
    %c0_i32_0 = arith.constant 0 : i32
    %c0_i32_1 = arith.constant 0 : i32
    return %c0_i32, %c0_i32_0 : i32, i32
  }
  func.func @transform_3(%arg0: i32) -> (i32, i32) {
    %c0_i32 = arith.constant 0 : i32
    %c0_i32_0 = arith.constant 0 : i32
    %c0_i32_1 = arith.constant 0 : i32
    return %c0_i32, %c0_i32_0 : i32, i32
  }
  func.func @transform_4(%arg0: i32) -> (i32, i32) {
    %c0_i32 = arith.constant 0 : i32
    %c0_i32_0 = arith.constant 0 : i32
    return %c0_i32, %arg0 : i32, i32
  }
}

module attributes {stable_mosaic.version = 11 : i64} {
  func.func @_conv_mm_prelu_kernel(%arg0: i32, %arg1: memref<16x90xbf16, #tpu.memory_space<vmem>>, %arg2: memref<90x256xbf16, #tpu.memory_space<vmem>>, %arg3: memref<16x1xf32, #tpu.memory_space<vmem>>, %arg4: memref<16x1xf32, #tpu.memory_space<vmem>>, %arg5: memref<16x256xbf16, #tpu.memory_space<vmem>>) attributes {dimension_semantics = [#tpu.dimension_semantics<parallel>], iteration_bounds = array<i64: 2>, scalar_prefetch = 0 : i64, scratch_operands = 0 : i64, tpu.core_type = #tpu.core_type<tc>, window_params = [{pipeline_mode = #tpu.pipeline_mode<synchronous>, transform_indices = @transform_0, window_bounds = array<i64: 16, 90>}, {transform_indices = @transform_1, window_bounds = array<i64: 90, 256>}, {pipeline_mode = #tpu.pipeline_mode<synchronous>, transform_indices = @transform_2, window_bounds = array<i64: 16, 1>}, {pipeline_mode = #tpu.pipeline_mode<synchronous>, transform_indices = @transform_3, window_bounds = array<i64: 16, 1>}, {transform_indices = @transform_4, window_bounds = array<i64: 16, 256>}]} {
    %c0 = arith.constant 0 : index
    %c0_0 = arith.constant 0 : index
    %0 = vector.load %arg1[%c0, %c0_0] : memref<16x90xbf16, #tpu.memory_space<vmem>>, vector<16x90xbf16>
    %c0_1 = arith.constant 0 : index
    %c0_2 = arith.constant 0 : index
    %1 = vector.load %arg2[%c0_1, %c0_2] : memref<90x256xbf16, #tpu.memory_space<vmem>>, vector<90x256xbf16>
    %cst = arith.constant dense<0.000000e+00> : vector<16x256xf32>
    %2 = tpu.matmul %0, %1, %cst {dimension_numbers = #tpu.dot_dimension_numbers<[1], [0], [0], [1], [0, 0, 1, 1], [], []>} : vector<16x90xbf16>, vector<90x256xbf16>, vector<16x256xf32> -> vector<16x256xf32>
    %c0_3 = arith.constant 0 : index
    %c0_4 = arith.constant 0 : index
    %3 = vector.load %arg3[%c0_3, %c0_4] : memref<16x1xf32, #tpu.memory_space<vmem>>, vector<16x1xf32>
    %4 = vector.broadcast %3 : vector<16x1xf32> to vector<16x256xf32>
    %5 = arith.addf %2, %4 : vector<16x256xf32>
    %cst_5 = arith.constant 0.000000e+00 : f32
    %6 = vector.broadcast %cst_5 : f32 to vector<16x256xf32>
    %7 = arith.cmpf ogt, %5, %6 : vector<16x256xf32>
    %c0_6 = arith.constant 0 : index
    %c0_7 = arith.constant 0 : index
    %8 = vector.load %arg4[%c0_6, %c0_7] : memref<16x1xf32, #tpu.memory_space<vmem>>, vector<16x1xf32>
    %9 = vector.broadcast %8 : vector<16x1xf32> to vector<16x256xf32>
    %10 = arith.mulf %5, %9 : vector<16x256xf32>
    %11 = arith.select %7, %5, %10 : vector<16x256xi1>, vector<16x256xf32>
    %12 = arith.truncf %11 : vector<16x256xf32> to vector<16x256xbf16>
    %c0_8 = arith.constant 0 : index
    %c0_9 = arith.constant 0 : index
    %13 = vector.load %arg5[%c0_8, %c0_9] : memref<16x256xbf16, #tpu.memory_space<vmem>>, vector<16x256xbf16>
    tpu.vector_store %arg5[%c0_8, %c0_9], %12 {strides = array<i32>} : memref<16x256xbf16, #tpu.memory_space<vmem>>, vector<16x256xbf16>,
    return
  }
  func.func @transform_0(%arg0: i32) -> (i32, i32) {
    %c0_i32 = arith.constant 0 : i32
    %c0_i32_0 = arith.constant 0 : i32
    %c0_i32_1 = arith.constant 0 : i32
    return %c0_i32, %c0_i32_0 : i32, i32
  }
  func.func @transform_1(%arg0: i32) -> (i32, i32) {
    %c0_i32 = arith.constant 0 : i32
    %c0_i32_0 = arith.constant 0 : i32
    return %c0_i32, %arg0 : i32, i32
  }
  func.func @transform_2(%arg0: i32) -> (i32, i32) {
    %c0_i32 = arith.constant 0 : i32
    %c0_i32_0 = arith.constant 0 : i32
    %c0_i32_1 = arith.constant 0 : i32
    return %c0_i32, %c0_i32_0 : i32, i32
  }
  func.func @transform_3(%arg0: i32) -> (i32, i32) {
    %c0_i32 = arith.constant 0 : i32
    %c0_i32_0 = arith.constant 0 : i32
    %c0_i32_1 = arith.constant 0 : i32
    return %c0_i32, %c0_i32_0 : i32, i32
  }
  func.func @transform_4(%arg0: i32) -> (i32, i32) {
    %c0_i32 = arith.constant 0 : i32
    %c0_i32_0 = arith.constant 0 : i32
    return %c0_i32, %arg0 : i32, i32
  }
}

module attributes {stable_mosaic.version = 11 : i64} {
  func.func @_conv3_heads_kernel(%arg0: i32, %arg1: memref<32x144xbf16, #tpu.memory_space<vmem>>, %arg2: memref<144x128xbf16, #tpu.memory_space<vmem>>, %arg3: memref<32x1xf32, #tpu.memory_space<vmem>>, %arg4: memref<32x1xf32, #tpu.memory_space<vmem>>, %arg5: memref<8x32xbf16, #tpu.memory_space<vmem>>, %arg6: memref<8x1xf32, #tpu.memory_space<vmem>>, %arg7: memref<8x128xf32, #tpu.memory_space<vmem>>) attributes {dimension_semantics = [#tpu.dimension_semantics<parallel>], iteration_bounds = array<i64: 2>, scalar_prefetch = 0 : i64, scratch_operands = 0 : i64, tpu.core_type = #tpu.core_type<tc>, window_params = [{pipeline_mode = #tpu.pipeline_mode<synchronous>, transform_indices = @transform_0, window_bounds = array<i64: 32, 144>}, {transform_indices = @transform_1, window_bounds = array<i64: 144, 128>}, {pipeline_mode = #tpu.pipeline_mode<synchronous>, transform_indices = @transform_2, window_bounds = array<i64: 32, 1>}, {pipeline_mode = #tpu.pipeline_mode<synchronous>, transform_indices = @transform_3, window_bounds = array<i64: 32, 1>}, {pipeline_mode = #tpu.pipeline_mode<synchronous>, transform_indices = @transform_4, window_bounds = array<i64: 8, 32>}, {pipeline_mode = #tpu.pipeline_mode<synchronous>, transform_indices = @transform_5, window_bounds = array<i64: 8, 1>}, {transform_indices = @transform_6, window_bounds = array<i64: 8, 128>}]} {
    %c0 = arith.constant 0 : index
    %c0_0 = arith.constant 0 : index
    %0 = vector.load %arg1[%c0, %c0_0] : memref<32x144xbf16, #tpu.memory_space<vmem>>, vector<32x144xbf16>
    %c0_1 = arith.constant 0 : index
    %c0_2 = arith.constant 0 : index
    %1 = vector.load %arg2[%c0_1, %c0_2] : memref<144x128xbf16, #tpu.memory_space<vmem>>, vector<144x128xbf16>
    %cst = arith.constant dense<0.000000e+00> : vector<32x128xf32>
    %2 = tpu.matmul %0, %1, %cst {dimension_numbers = #tpu.dot_dimension_numbers<[1], [0], [0], [1], [0, 0, 1, 1], [], []>} : vector<32x144xbf16>, vector<144x128xbf16>, vector<32x128xf32> -> vector<32x128xf32>
    %c0_3 = arith.constant 0 : index
    %c0_4 = arith.constant 0 : index
    %3 = vector.load %arg3[%c0_3, %c0_4] : memref<32x1xf32, #tpu.memory_space<vmem>>, vector<32x1xf32>
    %4 = vector.broadcast %3 : vector<32x1xf32> to vector<32x128xf32>
    %5 = arith.addf %2, %4 : vector<32x128xf32>
    %cst_5 = arith.constant 0.000000e+00 : f32
    %6 = vector.broadcast %cst_5 : f32 to vector<32x128xf32>
    %7 = arith.cmpf ogt, %5, %6 : vector<32x128xf32>
    %c0_6 = arith.constant 0 : index
    %c0_7 = arith.constant 0 : index
    %8 = vector.load %arg4[%c0_6, %c0_7] : memref<32x1xf32, #tpu.memory_space<vmem>>, vector<32x1xf32>
    %9 = vector.broadcast %8 : vector<32x1xf32> to vector<32x128xf32>
    %10 = arith.mulf %5, %9 : vector<32x128xf32>
    %11 = arith.select %7, %5, %10 : vector<32x128xi1>, vector<32x128xf32>
    %c0_8 = arith.constant 0 : index
    %c0_9 = arith.constant 0 : index
    %12 = vector.load %arg5[%c0_8, %c0_9] : memref<8x32xbf16, #tpu.memory_space<vmem>>, vector<8x32xbf16>
    %13 = arith.truncf %11 : vector<32x128xf32> to vector<32x128xbf16>
    %cst_10 = arith.constant dense<0.000000e+00> : vector<8x128xf32>
    %14 = tpu.matmul %12, %13, %cst_10 {dimension_numbers = #tpu.dot_dimension_numbers<[1], [0], [0], [1], [0, 0, 1, 1], [], []>} : vector<8x32xbf16>, vector<32x128xbf16>, vector<8x128xf32> -> vector<8x128xf32>
    %c0_11 = arith.constant 0 : index
    %c0_12 = arith.constant 0 : index
    %15 = vector.load %arg6[%c0_11, %c0_12] : memref<8x1xf32, #tpu.memory_space<vmem>>, vector<8x1xf32>
    %16 = vector.broadcast %15 : vector<8x1xf32> to vector<8x128xf32>
    %17 = arith.addf %14, %16 : vector<8x128xf32>
    %18 = vector.extract_strided_slice %17 {offsets = [0, 0], sizes = [1, 128], strides = [1, 1]} : vector<8x128xf32> to vector<1x128xf32>
    %19 = vector.extract_strided_slice %17 {offsets = [1, 0], sizes = [1, 128], strides = [1, 1]} : vector<8x128xf32> to vector<1x128xf32>
    %20 = arith.subf %18, %19 : vector<1x128xf32>
    %21 = math.exp %20 : vector<1x128xf32>
    %cst_13 = arith.constant 1.000000e+00 : f32
    %22 = vector.broadcast %cst_13 : f32 to vector<1x128xf32>
    %23 = arith.addf %22, %21 : vector<1x128xf32>
    %cst_14 = arith.constant 1.000000e+00 : f32
    %24 = vector.broadcast %cst_14 : f32 to vector<1x128xf32>
    %25 = arith.divf %24, %23 : vector<1x128xf32>
    %cst_15 = arith.constant 1.000000e+00 : f32
    %26 = vector.broadcast %cst_15 : f32 to vector<1x128xf32>
    %27 = arith.subf %26, %25 : vector<1x128xf32>
    %28 = vector.extract_strided_slice %17 {offsets = [2, 0], sizes = [6, 128], strides = [1, 1]} : vector<8x128xf32> to vector<6x128xf32>
    %29 = tpu.concatenate %27, %25, %28 in 0 : vector<1x128xf32>, vector<1x128xf32>, vector<6x128xf32> -> vector<8x128xf32>
    %c0_16 = arith.constant 0 : index
    %c0_17 = arith.constant 0 : index
    %30 = vector.load %arg7[%c0_16, %c0_17] : memref<8x128xf32, #tpu.memory_space<vmem>>, vector<8x128xf32>
    tpu.vector_store %arg7[%c0_16, %c0_17], %29 {strides = array<i32>} : memref<8x128xf32, #tpu.memory_space<vmem>>, vector<8x128xf32>,
    return
  }
  func.func @transform_0(%arg0: i32) -> (i32, i32) {
    %c0_i32 = arith.constant 0 : i32
    %c0_i32_0 = arith.constant 0 : i32
    %c0_i32_1 = arith.constant 0 : i32
    return %c0_i32, %c0_i32_0 : i32, i32
  }
  func.func @transform_1(%arg0: i32) -> (i32, i32) {
    %c0_i32 = arith.constant 0 : i32
    %c0_i32_0 = arith.constant 0 : i32
    return %c0_i32, %arg0 : i32, i32
  }
  func.func @transform_2(%arg0: i32) -> (i32, i32) {
    %c0_i32 = arith.constant 0 : i32
    %c0_i32_0 = arith.constant 0 : i32
    %c0_i32_1 = arith.constant 0 : i32
    return %c0_i32, %c0_i32_0 : i32, i32
  }
  func.func @transform_3(%arg0: i32) -> (i32, i32) {
    %c0_i32 = arith.constant 0 : i32
    %c0_i32_0 = arith.constant 0 : i32
    %c0_i32_1 = arith.constant 0 : i32
    return %c0_i32, %c0_i32_0 : i32, i32
  }
  func.func @transform_4(%arg0: i32) -> (i32, i32) {
    %c0_i32 = arith.constant 0 : i32
    %c0_i32_0 = arith.constant 0 : i32
    %c0_i32_1 = arith.constant 0 : i32
    return %c0_i32, %c0_i32_0 : i32, i32
  }
  func.func @transform_5(%arg0: i32) -> (i32, i32) {
    %c0_i32 = arith.constant 0 : i32
    %c0_i32_0 = arith.constant 0 : i32
    %c0_i32_1 = arith.constant 0 : i32
    return %c0_i32, %c0_i32_0 : i32, i32
  }
  func.func @transform_6(%arg0: i32) -> (i32, i32) {
    %c0_i32 = arith.constant 0 : i32
    %c0_i32_0 = arith.constant 0 : i32
    return %c0_i32, %arg0 : i32, i32
  }
}

</mosaic_0001>

<bundles_post_ra>
// kernel: pnet_forward.3
= control target key start
LH: loop header
LB: loop body
LE: loop exit
PB: predicated region body
PF: predicated region fallthrough
CT: control target
= control target key end

     0   :  { %s903_s15 = smov 0   ;;  %s905_s16 = smov 0   ;;  %s1089_s0 = inlined_call_operand.vmem [shape: bf16[10,27], index: 0, kind: input, shape index: {}]   ;;  %s1090_s1 = inlined_call_operand.vmem [shape: bf16[27,2048], index: 1, kind: input, shape index: {}]   ;;  %s1091_s2 = inlined_call_operand.vmem [shape: f32[10,1], index: 2, kind: input, shape index: {}]   ;;  %s1092_s3 = inlined_call_operand.vmem [shape: f32[10,1], index: 3, kind: input, shape index: {}]   ;;  %s1093_s4 = inlined_call_operand.vmem [shape: bf16[10,2048], index: 4, kind: output, shape index: {}]  }
   0x1   :  { %s907_s17 = smov 0  }
   0x2 LB: > { %s769_s18 = sadd.s32 4294967295, %s874_s17   ;;  %s920_s19 = sadd.s32 1, %s874_s17   ;;  %s874_s17 = sphi %s907_s17, %s1097_s17   ;;  %s870_s16 = sphi %s905_s16, %s1096_s16   ;;  %s866_s15 = sphi %s903_s15, %s1095_s15  }
   0x3   : > { %s39_s20 = ssub.s32 %s874_s17, %s920_s19  ;;  %s42_s21 = sadd.s32 1, %s870_s16 }
   0x4   : > { %p40_p0 = scmp.eq.s32.totalorder %s39_s20, 0  ;;  %p49_p1 = scmp.ne.s32.totalorder %s870_s16, %s866_s15 }
   0x5   : > { %p50_p2 = scmp.eq.s32.totalorder %s874_s17, 0  ;;  %p121_p3 = scmp.eq.s32.totalorder %s769_s18, 1 }
   0x6   : > { %s931_s22 = scalar_select %p40_p0, %s870_s16, %s42_s21  }
   0x7   : > { %p51_p4 = por %p50_p2, %p49_p1  ;;  %p933_p5 = por %p121_p3, %p49_p1 }
   0x8   : > { %p772_p6 = scmp.ge.s32.totalorder %s874_s17, 2 }
   0xa   : > { %152 = sbr.rel (%p772_p6) target bundleno = 27 (0x1b), region = 28 }
   0xf   : > { %155 = sbr.rel (!%p51_p4) target bundleno = 27 (0x1b), region = 32  ;;  %s157_s24 = sand.u32 (%p51_p4), 1, %s870_s16  }
  0x10   : > { %s813_s25 = sshll.u32 (%p51_p4), %s874_s17, 5  ;;  %s773_s26 = sshll.u32 (%p51_p4), %s157_s24, 7 }
  0x11   : > { %s943_s29 = scalar_lea.vmem (%p51_p4), %s1090_s1, %s813_s25  ;;  %s159_s30 = scalar_lea.vmem (%p51_p4), [#allocation2], %s773_s26 }
  0x12   : > { %v175_v0 = vld [vmem:[%s943_s29] sm:$0xff] (%p51_p4)  ;;  %v177_v1 = vld [vmem:[%s943_s29 + $0x8] sm:$0xff] (%p51_p4)  ;;  %v179_v2 = vld [vmem:[%s943_s29 + $0x10] sm:$0xff] (%p51_p4) }
  0x13   : > { %176 = vst [vmem:[%s159_s30] sm:$0xff] (%p51_p4), %v175_v0  ;;  %178 = vst [vmem:[%s159_s30 + $0x8] sm:$0xff] (%p51_p4), %v177_v1  ;;  %v181_v3 = vld [vmem:[%s943_s29 + $0x18] sm:$0xff] (%p51_p4)  ;;  %v183_v4 = vld [vmem:[%s943_s29 + $0x40] sm:$0xff] (%p51_p4) }
  0x14   : > { %180 = vst [vmem:[%s159_s30 + $0x10] sm:$0xff] %v179_v2  ;;  %v185_v5 = vld [vmem:[%s943_s29 + $0x48] sm:$0xff]  ;;  %182 = vst [vmem:[%s159_s30 + $0x18] sm:$0xff] %v181_v3  ;;  %v187_v6 = vld [vmem:[%s943_s29 + $0x50] sm:$0xff] }
  0x15   : > { %184 = vst [vmem:[%s159_s30 + $0x20] sm:$0xff] %v183_v4  ;;  %186 = vst [vmem:[%s159_s30 + $0x28] sm:$0xff] %v185_v5  ;;  %v189_v7 = vld [vmem:[%s943_s29 + $0x58] sm:$0xff]  ;;  %v191_v8 = vld [vmem:[%s943_s29 + $0x80] sm:$0xff] }
  0x16   : > { %188 = vst [vmem:[%s159_s30 + $0x30] sm:$0xff] %v187_v6  ;;  %190 = vst [vmem:[%s159_s30 + $0x38] sm:$0xff] %v189_v7  ;;  %v193_v9 = vld [vmem:[%s943_s29 + $0x88] sm:$0xff]  ;;  %v195_v10 = vld [vmem:[%s943_s29 + $0x90] sm:$0xff] }
  0x17   : > { %192 = vst [vmem:[%s159_s30 + $0x40] sm:$0xff] %v191_v8  ;;  %v197_v11 = vld [vmem:[%s943_s29 + $0x98] sm:$0xff]  ;;  %194 = vst [vmem:[%s159_s30 + $0x48] sm:$0xff] %v193_v9  ;;  %v199_v12 = vld [vmem:[%s943_s29 + $0xc0] sm:$0xff] }
  0x18   : > { %196 = vst [vmem:[%s159_s30 + $0x50] sm:$0xff] %v195_v10  ;;  %198 = vst [vmem:[%s159_s30 + $0x58] sm:$0xff] %v197_v11  ;;  %v201_v13 = vld [vmem:[%s943_s29 + $0xc8] sm:$0xff]  ;;  %v203_v14 = vld [vmem:[%s943_s29 + $0xd0] sm:$0xff] }
  0x19   : > { %200 = vst [vmem:[%s159_s30 + $0x60] sm:$0xff] %v199_v12  ;;  %202 = vst [vmem:[%s159_s30 + $0x68] sm:$0xff] %v201_v13  ;;  %v205_v15 = vld [vmem:[%s943_s29 + $0xd8] sm:$0xff] }
  0x1a   : > { %204 = vst [vmem:[%s159_s30 + $0x70] sm:$0xff] %v203_v14  ;;  %206 = vst [vmem:[%s159_s30 + $0x78] sm:$0xff] %v205_v15 }
  0x1b PF: > { %p776_p7 = scmp.ge.s32.totalorder %s874_s17, 1  ;;  %p211_p8 = scmp.lt.s32.totalorder %s874_s17, 3 }
  0x1d   : > { %p212_p9 = pnand %p776_p7, %p211_p8 }
  0x1e   : > { %s218_s5 = sand.u32 (!%p212_p9), 1, %s866_s15  }
  0x1f   : > { %215 = sbr.rel (%p212_p9) target bundleno = 276 (0x114), region = 55  ;;  %s777_s8 = sshll.u32 (!%p212_p9), %s218_s5, 7 }
  0x20   : > { %s976_s11 = scalar_lea.vmem (!%p212_p9), [#allocation2], %s777_s8  ;;  %s778_s25 = sshll.u32 (!%p212_p9), %s218_s5, 6 }
  0x21   : > { %s1034_s15 = scalar_lea.vmem (!%p212_p9), [#allocation3], %s778_s25 }
  0x24   : > { %vm356_vm0 = vcmask 1044480   ;;  %vm357_vm1 = vcmask 1045504   ;;  %v263_v16 = vld [vmem:[%s1091_s2] sm:$0xff]  ;;  %v876_v17 = vmov 65535   ;;  %v877_v19 = vmov 0   ;;  %v256_v24 = vld [vmem:[%s976_s11 + $0x48] sm:$0xff] }
  0x25   : > { %v358_v18 = vsel %vm356_vm0, 4294967295, %v876_v17  ;;  %416 = vmatprep.mubr.bf16.mxu0 %v877_v19  ;;  %459 = vmatprep.mubr.bf16.mxu1 %v877_v19  ;;  %v572_v20 = vld [vmem:[%s1092_s3] sm:$0xff]  ;;  %v260_v26 = vld [vmem:[%s976_s11 + $0x68] sm:$0x33]  ;;  %v257_v34 = vld [vmem:[%s976_s11 + $0x50] sm:$0xff]  ;;  %vm352_vm2 = vcmask 220160  }
  0x26   : > { %849 = vset.pattern.permute.xlu0 %v877_v19  ;;  %850 = vset.pattern.permute.xlu1 %v877_v19  ;;  %v255_v21 = vld [vmem:[%s976_s11 + $0x40] sm:$0xff]  ;;  %v359_v23 = vsel %vm357_vm1, %v358_v18, 0  ;;  %v791_v30 = vcombine.high %v256_v24, %v260_v26  ;;  %v790_v31 = vcombine.low %v256_v24, %v260_v26  ;;  %v248_v32 = vld [vmem:[%s976_s11 + $0x8] sm:$0xff]  ;;  %v261_v38 = vld [vmem:[%s976_s11 + $0x70] sm:$0x33]  ;;  %s822_s26 = sshll.u32 (%p933_p5), %s769_s18, 5 }
  0x27   : > { %v259_v22 = vld [vmem:[%s976_s11 + $0x60] sm:$0x33]  ;;  %267 = vperm.xlu0 %849, %v263_v16   ;;  %576 = vperm.xlu1 %850, %v572_v20   ;;  %v252_v33 = vld [vmem:[%s976_s11 + $0x28] sm:$0xff]  ;;  %v258_v39 = vld [vmem:[%s976_s11 + $0x58] sm:$0xff]  ;;  %v793_v44 = vcombine.high %v257_v34, %v261_v38  ;;  %v792_v48 = vcombine.low %v257_v34, %v261_v38  ;;  %s681_s29 = scalar_lea.vmem (%p933_p5), %s1093_s4, %s822_s26 }
  0x28   : > { %v789_v25 = vcombine.high %v255_v21, %v259_v22  ;;  %v788_v27 = vcombine.low %v255_v21, %v259_v22  ;;  %v247_v28 = vld [vmem:[%s976_s11] sm:$0xff]  ;;  %v262_v40 = vld [vmem:[%s976_s11 + $0x78] sm:$0x33]  ;;  %v370_v41 = vand.u32 %v791_v30, %v359_v23  ;;  %v367_v42 = vand.u32 %v790_v31, %v359_v23  ;;  %v264_v46 = vld [vmem:[%s1091_s2 + $0x8] sm:$0x3] }
  0x29   : > { %v251_v29 = vld [vmem:[%s976_s11 + $0x20] sm:$0xff]  ;;  %v783_v43 = vcombine.high %v248_v32, %v252_v33  ;;  %v795_v45 = vcombine.high %v258_v39, %v262_v40  ;;  %v573_v49 = vld [vmem:[%s1092_s3 + $0x8] sm:$0x3]  ;;  %v782_v50 = vcombine.low %v248_v32, %v252_v33  ;;  %v376_v51 = vand.u32 %v793_v44, %v359_v23  ;;  %v249_v54 = vld [vmem:[%s976_s11 + $0x10] sm:$0xff] }
  0x2a   : > { %v364_v35 = vand.u32 %v789_v25, %v359_v23  ;;  %v361_v36 = vand.u32 %v788_v27, %v359_v23  ;;  %v781_v37 = vcombine.high %v247_v28, %v251_v29  ;;  %439 = vmatprep.subr.bf16.mxu1 %v370_v41  ;;  %v780_v47 = vcombine.low %v247_v28, %v251_v29  ;;  %v253_v55 = vld [vmem:[%s976_s11 + $0x30] sm:$0xff]  ;;  %v851_v56 = vld [vmem:[%s1089_s0] sm:$0x1f]   ;;  %v250_v57 = vld [vmem:[%s976_s11 + $0x18] sm:$0xff] }
  0x2b   : > { %440 = vmatpush1.bf16.msra.mxu1 %v367_v42  ;;  %v794_v52 = vcombine.low %v258_v39, %v262_v40  ;;  %v382_v53 = vand.u32 %v795_v45, %v359_v23  ;;  %272 = vperm.xlu0 %849, %v264_v46   ;;  %v254_v58 = vld [vmem:[%s976_s11 + $0x38] sm:$0xff]  ;;  %v373_v59 = vand.u32 %v792_v48, %v359_v23 }
  0x2c   : > { %396 = vmatprep.subr.bf16.mxu0 %v364_v35  ;;  %441 = vmatprep.subr.bf16.mxu1 %v783_v43  ;;  %v785_v61 = vcombine.high %v249_v54, %v253_v55  ;;  %v787_v62 = vcombine.high %v250_v57, %v254_v58  ;;  %v784_v63 = vcombine.low %v249_v54, %v253_v55 }
  0x2d   : > { %397 = vmatpush1.bf16.msra.mxu0 %v361_v36  ;;  %581 = vperm.xlu1 %850, %v573_v49   ;;  %v379_v60 = vand.u32 %v794_v52, %v359_v23  ;;  %v786_v0 = vcombine.low %v250_v57, %v254_v58 }
  0x2e   : > { %398 = vmatprep.subr.bf16.mxu0 %v781_v37 }
  0x2f   : > { %442 = vmatpush1.bf16.msra.mxu1 %v782_v50 }
  0x30   : > { %525 = vmatprep.subr.bf16.mxu1 %v382_v53 }
  0x31   : > { %399 = vmatpush1.bf16.msra.mxu0 %v780_v47 }
  0x32   : > { %482 = vmatprep.subr.bf16.mxu0 %v376_v51  ;;  %797 = vmatmul.mubr.msk.bf16.vlgmr.msra.gmra.mxu1 %vm352_vm2, %v851_v56 }
  0x33   : > { %526 = vmatpush1.bf16.msra.mxu1 %v379_v60  ;;  %545 = vmatprep.mubr.bf16.mxu1 %v877_v19 }
  0x34   : > { %796 = vmatmul.mubr.msk.bf16.vlgmr.msra.gmra.mxu0 %vm352_vm2, %v851_v56  ;;  %527 = vmatprep.subr.bf16.mxu1 %v787_v62 }
  0x35   : > { %483 = vmatpush1.bf16.msra.mxu0 %v373_v59  ;;  %502 = vmatprep.mubr.bf16.mxu0 %v877_v19 }
  0x36   : > { %484 = vmatprep.subr.bf16.mxu0 %v785_v61 }
  0x37   : > { %528 = vmatpush1.bf16.msra.mxu1 %v786_v0 }
  0x39   : > { %485 = vmatpush1.bf16.msra.mxu0 %v784_v63 }
  0x3a   : > { %799 = vmatmul.mubr.msk.bf16.vlgmr.msra.gmra.mxu1 %vm352_vm2, %v851_v56 }
  0x3c   : > { %798 = vmatmul.mubr.msk.bf16.vlgmr.msra.gmra.mxu0 %vm352_vm2, %v851_v56 }
  0xa2   : > { %v1009_v1 = vpop.permute.xlu0 %267  ;;  %v1011_v2 = vpop.permute.xlu1 %576 }
  0xa6   : > { %v1015_v8 = vpop.permute.xlu0 %272 }
  0xa8   : > { %v1023_v15 = vpop.permute.xlu1 %581 }
  0xf2   : > { %v461_v5 = vpop.f32.mrf.mxu1 }
  0xf3   : > { %v462_v6 = vadd.f32 %v461_v5, %v1009_v1 }
  0xf4   : > { %v418_v3 = vpop.f32.mrf.mxu0  ;;  %v463_v11 = vpop.f32.mrf.mxu1 }
  0xf5   : > { %v419_v4 = vadd.f32 %v418_v3, %v1009_v1  ;;  %vm558_vm4 = vcmp.gt.f32.partialorder %v462_v6, 0.0  ;;  %v464_v12 = vadd.f32 %v463_v11, %v1009_v1  ;;  %v586_v13 = vmul.f32 %v1011_v2, %v462_v6 }
  0xf6   : > { %v420_v7 = vpop.f32.mrf.mxu0  ;;  %v465_v18 = vpop.f32.mrf.mxu1 }
  0xf7   : > { %vm556_vm3 = vcmp.gt.f32.partialorder %v419_v4, 0.0  ;;  %v421_v9 = vadd.f32 %v420_v7, %v1009_v1  ;;  %v584_v10 = vmul.f32 %v1011_v2, %v419_v4  ;;  %vm559_vm6 = vcmp.gt.f32.partialorder %v464_v12, 0.0 }
  0xf8   : > { %v422_v14 = vpop.f32.mrf.mxu0  ;;  %v587_v20 = vmul.f32 %v1011_v2, %v464_v12  ;;  %v466_v21 = vadd.f32 %v465_v18, %v1015_v8  ;;  %v602_v24 = vsel %vm558_vm4, %v462_v6, %v586_v13  ;;  %v467_v27 = vpop.f32.mrf.mxu1 }
  0xf9   : > { %vm557_vm5 = vcmp.gt.f32.partialorder %v421_v9, 0.0  ;;  %v585_v16 = vmul.f32 %v1011_v2, %v421_v9  ;;  %v423_v17 = vadd.f32 %v422_v14, %v1015_v8  ;;  %v600_v19 = vsel %vm556_vm3, %v419_v4, %v584_v10 }
  0xfa   : > { %v424_v22 = vpop.f32.mrf.mxu0  ;;  %v603_v29 = vsel %vm559_vm6, %v464_v12, %v587_v20  ;;  %v468_v30 = vadd.f32 %v467_v27, %v1015_v8  ;;  %vm566_vm8 = vcmp.gt.f32.partialorder %v466_v21, 0.0  ;;  %v547_v34 = vpop.f32.mrf.mxu1  ;;  %v594_v35 = vmul.f32 %v1023_v15, %v466_v21 }
  0xfb   : > { %v601_v23 = vsel %vm557_vm5, %v421_v9, %v585_v16  ;;  %v425_v25 = vadd.f32 %v424_v22, %v1015_v8  ;;  %v592_v26 = vmul.f32 %v1023_v15, %v423_v17  ;;  %vm564_vm7 = vcmp.gt.f32.partialorder %v423_v17, 0.0 }
  0xfc   : > { %v814_v28 = vpack.c.bf16 %v601_v23, %v600_v19  ;;  %v504_v31 = vpop.f32.mrf.mxu0  ;;  %v815_v32 = vpack.c.bf16 %v603_v29, %v602_v24  ;;  %vm567_vm10 = vcmp.gt.f32.partialorder %v468_v30, 0.0  ;;  %v595_v36 = vmul.f32 %v1023_v15, %v468_v30  ;;  %v549_v43 = vpop.f32.mrf.mxu1 }
  0xfd   : > { %vm565_vm9 = vcmp.gt.f32.partialorder %v425_v25, 0.0  ;;  %v593_v33 = vmul.f32 %v1023_v15, %v425_v25  ;;  %v505_v37 = vadd.f32 %v504_v31, %v1009_v1  ;;  %v608_v39 = vsel %vm564_vm7, %v423_v17, %v592_v26 }
  0xfe   : > { %664 = vst [vmem:[%s1034_s15] sm:$0xff] %v814_v28  ;;  %v506_v38 = vpop.f32.mrf.mxu0  ;;  %665 = vst [vmem:[%s1034_s15 + $0x8] sm:$0xff] %v815_v32  ;;  %v548_v41 = vadd.f32 %v547_v34, %v1009_v1  ;;  %v610_v45 = vsel %vm566_vm8, %v466_v21, %v594_v35  ;;  %v611_v46 = vsel %vm567_vm10, %v468_v30, %v595_v36  ;;  %v551_v51 = vpop.f32.mrf.mxu1 }
  0xff   : > { %v609_v40 = vsel %vm565_vm9, %v425_v25, %v593_v33  ;;  %v507_v42 = vadd.f32 %v506_v38, %v1009_v1  ;;  %vm560_vm11 = vcmp.gt.f32.partialorder %v505_v37, 0.0  ;;  %v819_v48 = vpack.c.bf16 %v611_v46, %v610_v45 }
 0x100   : > { %v818_v44 = vpack.c.bf16 %v609_v40, %v608_v39  ;;  %v508_v47 = vpop.f32.mrf.mxu0  ;;  %v588_v49 = vmul.f32 %v1011_v2, %v505_v37  ;;  %vm562_vm12 = vcmp.gt.f32.partialorder %v548_v41, 0.0  ;;  %v590_v50 = vmul.f32 %v1011_v2, %v548_v41  ;;  %v553_v59 = vpop.f32.mrf.mxu1 }
 0x101   : > { %vm561_vm13 = vcmp.gt.f32.partialorder %v507_v42, 0.0  ;;  %v589_v52 = vmul.f32 %v1011_v2, %v507_v42  ;;  %v550_v53 = vadd.f32 %v549_v43, %v1009_v1  ;;  %v509_v54 = vadd.f32 %v508_v47, %v1015_v8  ;;  %669 = vst [vmem:[%s1034_s15 + $0x28] sm:$0x11] %v819_v48 }
 0x102   : > { %668 = vst [vmem:[%s1034_s15 + $0x20] sm:$0x11] %v818_v44  ;;  %v510_v55 = vpop.f32.mrf.mxu0  ;;  %v604_v56 = vsel %vm560_vm11, %v505_v37, %v588_v49  ;;  %v552_v57 = vadd.f32 %v551_v51, %v1015_v8  ;;  %v606_v60 = vsel %vm562_vm12, %v548_v41, %v590_v50  ;;  %v554_v5 = vadd.f32 %v553_v59, %v1015_v8 }
 0x103   : > { %v511_v58 = vadd.f32 %v510_v55, %v1015_v8  ;;  %v605_v61 = vsel %vm561_vm13, %v507_v42, %v589_v52  ;;  %vm563_vm14 = vcmp.gt.f32.partialorder %v550_v53, 0.0  ;;  %v591_v62 = vmul.f32 %v1011_v2, %v550_v53 }
 0x104   : > { %v816_v63 = vpack.c.bf16 %v605_v61, %v604_v56  ;;  %vm568_vm15 = vcmp.gt.f32.partialorder %v509_v54, 0.0  ;;  %v596_v0 = vmul.f32 %v1023_v15, %v509_v54  ;;  %v598_v1 = vmul.f32 %v1023_v15, %v552_v57 }
 0x105   : > { %v607_v3 = vsel %vm563_vm14, %v550_v53, %v591_v62  ;;  %vm569_vm0 = vcmp.gt.f32.partialorder %v511_v58, 0.0  ;;  %v597_v4 = vmul.f32 %v1023_v15, %v511_v58  ;;  %vm570_vm1 = vcmp.gt.f32.partialorder %v552_v57, 0.0  ;;  %v694_v8 = vld [vmem:[%s1034_s15] sm:$0xff] (%p933_p5)  ;;  %v696_v14 = vld [vmem:[%s1034_s15 + $0x8] sm:$0xff] (%p933_p5) }
 0x106   : > { %666 = vst [vmem:[%s1034_s15 + $0x10] sm:$0xff] %v816_v63  ;;  %v817_v6 = vpack.c.bf16 %v607_v3, %v606_v60  ;;  %v612_v7 = vsel %vm568_vm15, %v509_v54, %v596_v0  ;;  %vm571_vm2 = vcmp.gt.f32.partialorder %v554_v5, 0.0  ;;  %v599_v9 = vmul.f32 %v1023_v15, %v554_v5  ;;  %695 = vst [vmem:[%s681_s29] sm:$0xff] (%p933_p5), %v694_v8 }
 0x107   : > { %v613_v2 = vsel %vm569_vm0, %v511_v58, %v597_v4  ;;  %v614_v11 = vsel %vm570_vm1, %v552_v57, %v598_v1  ;;  %678 = sbr.rel (!%p933_p5) target bundleno = 276 (0x114), region = 63  ;;  %697 = vst [vmem:[%s681_s29 + $0x8] sm:$0xff] (%p933_p5), %v696_v14 }
 0x108   : > { %667 = vst [vmem:[%s1034_s15 + $0x18] sm:$0xff] %v817_v6  ;;  %v820_v10 = vpack.c.bf16 %v613_v2, %v612_v7  ;;  %v615_v12 = vsel %vm571_vm2, %v554_v5, %v599_v9  ;;  %v704_v18 = vld [vmem:[%s1034_s15 + $0x28] sm:$0xff] (%p933_p5) }
 0x109   : > { %v821_v13 = vpack.c.bf16 %v615_v12, %v614_v11  ;;  %v702_v17 = vld [vmem:[%s1034_s15 + $0x20] sm:$0xff] (%p933_p5)  ;;  %705 = vst [vmem:[%s681_s29 + $0x48] sm:$0xff] (%p933_p5), %v704_v18 }
 0x10a   : > { %670 = vst [vmem:[%s1034_s15 + $0x30] sm:$0x11] %v820_v10  ;;  %703 = vst [vmem:[%s681_s29 + $0x40] sm:$0xff] (%p933_p5), %v702_v17 }
 0x10b   : > { %671 = vst [vmem:[%s1034_s15 + $0x38] sm:$0x11] %v821_v13 }
 0x10d   : > { %v698_v15 = vld [vmem:[%s1034_s15 + $0x10] sm:$0xff] }
 0x10e   : > { %699 = vst [vmem:[%s681_s29 + $0x10] sm:$0xff] %v698_v15 }
 0x10f   : > { %v700_v16 = vld [vmem:[%s1034_s15 + $0x18] sm:$0xff] }
 0x110   : > { %701 = vst [vmem:[%s681_s29 + $0x18] sm:$0xff] %v700_v16 }
 0x111   : > { %v706_v19 = vld [vmem:[%s1034_s15 + $0x30] sm:$0xff] }
 0x112   : > { %v708_v20 = vld [vmem:[%s1034_s15 + $0x38] sm:$0xff]  ;;  %707 = vst [vmem:[%s681_s29 + $0x50] sm:$0xff] %v706_v19 }
 0x113   : > { %709 = vst [vmem:[%s681_s29 + $0x58] sm:$0xff] %v708_v20 }
 0x114 PF: > { %p11_p10 = scmp.ge.s32.totalorder %s920_s19, 4   ;;  %s1095_s15 = smov %s870_s16 }
 0x115   : > { %s1096_s16 = smov %s931_s22  ;;  %s1097_s17 = smov %s920_s19 }
 0x116   :  { %13 = sbr.rel (!%p11_p10) target bundleno = 2 (0x2), region = 117 }

// kernel: pnet_forward.4
= control target key start
LH: loop header
LB: loop body
LE: loop exit
PB: predicated region body
PF: predicated region fallthrough
CT: control target
= control target key end

     0   :  { %s691_s15 = smov 0   ;;  %s693_s16 = smov 0   ;;  %s770_s0 = inlined_call_operand.vmem [shape: bf16[16,90], index: 0, kind: input, shape index: {}]   ;;  %s771_s1 = inlined_call_operand.vmem [shape: bf16[90,512], index: 1, kind: input, shape index: {}]   ;;  %s772_s2 = inlined_call_operand.vmem [shape: f32[16,1], index: 2, kind: input, shape index: {}]   ;;  %s773_s3 = inlined_call_operand.vmem [shape: f32[16,1], index: 3, kind: input, shape index: {}]   ;;  %s774_s4 = inlined_call_operand.vmem [shape: bf16[16,512], index: 4, kind: output, shape index: {}]  }
   0x1   :  { %s695_s17 = smov 0  }
   0x2 LB: > { %s559_s18 = sadd.s32 4294967295, %s663_s17   ;;  %s708_s19 = sadd.s32 1, %s663_s17   ;;  %s663_s17 = sphi %s695_s17, %s778_s17   ;;  %s659_s16 = sphi %s693_s16, %s777_s16   ;;  %s655_s15 = sphi %s691_s15, %s776_s15  }
   0x3   : > { %s39_s20 = ssub.s32 %s663_s17, %s708_s19  ;;  %s42_s21 = sadd.s32 1, %s659_s16 }
   0x4   : > { %p40_p0 = scmp.eq.s32.totalorder %s39_s20, 0  ;;  %p49_p1 = scmp.ne.s32.totalorder %s659_s16, %s655_s15 }
   0x5   : > { %p50_p2 = scmp.eq.s32.totalorder %s663_s17, 0  ;;  %p121_p3 = scmp.eq.s32.totalorder %s559_s18, 1 }
   0x6   : > { %s719_s22 = scalar_select %p40_p0, %s659_s16, %s42_s21  }
   0x7   : > { %p51_p4 = por %p50_p2, %p49_p1  ;;  %p721_p5 = por %p121_p3, %p49_p1 }
   0x8   : > { %p562_p6 = scmp.ge.s32.totalorder %s663_s17, 2 }
   0xa   : > { %152 = sbr.rel (%p562_p6) target bundleno = 25 (0x19), region = 28 }
   0xf   : > { %155 = sbr.rel (!%p51_p4) target bundleno = 25 (0x19), region = 32  ;;  %s157_s24 = sand.u32 (%p51_p4), 1, %s659_s16  }
  0x10   : > { %s589_s25 = sshll.u32 (%p51_p4), %s663_s17, 3  ;;  %s593_s26 = smul.u32 (%p51_p4), 96, %s157_s24 }
  0x11   : > { %s162_s29 = scalar_lea.vmem (%p51_p4), %s771_s1, %s589_s25 }
  0x12   : > { %v213_v0 = vld [vmem:[%s162_s29] sm:$0xff] (%p51_p4)  ;;  %v215_v1 = vld [vmem:[%s162_s29 + $0x10] sm:$0xff] (%p51_p4)  ;;  %s159_s30 = scalar_lea.vmem (%p51_p4), [#allocation2], %s593_s26 }
  0x13   : > { %v217_v2 = vld [vmem:[%s162_s29 + $0x20] sm:$0xff] (%p51_p4)  ;;  %v219_v3 = vld [vmem:[%s162_s29 + $0x30] sm:$0xff] (%p51_p4)  ;;  %214 = vst [vmem:[%s159_s30] sm:$0xff] (%p51_p4), %v213_v0  ;;  %216 = vst [vmem:[%s159_s30 + $0x8] sm:$0xff] (%p51_p4), %v215_v1 }
  0x14   : > { %v221_v4 = vld [vmem:[%s162_s29 + $0x40] sm:$0xff]  ;;  %v223_v5 = vld [vmem:[%s162_s29 + $0x50] sm:$0xff]  ;;  %218 = vst [vmem:[%s159_s30 + $0x10] sm:$0xff] %v217_v2  ;;  %220 = vst [vmem:[%s159_s30 + $0x18] sm:$0xff] %v219_v3 }
  0x15   : > { %222 = vst [vmem:[%s159_s30 + $0x20] sm:$0xff] %v221_v4  ;;  %224 = vst [vmem:[%s159_s30 + $0x28] sm:$0xff] %v223_v5  ;;  %v225_v6 = vld [vmem:[%s162_s29 + $0x60] sm:$0xff]  ;;  %v227_v7 = vld [vmem:[%s162_s29 + $0x70] sm:$0xff] }
  0x16   : > { %v229_v8 = vld [vmem:[%s162_s29 + $0x80] sm:$0xff]  ;;  %226 = vst [vmem:[%s159_s30 + $0x30] sm:$0xff] %v225_v6  ;;  %228 = vst [vmem:[%s159_s30 + $0x38] sm:$0xff] %v227_v7  ;;  %v231_v9 = vld [vmem:[%s162_s29 + $0x90] sm:$0xff] }
  0x17   : > { %230 = vst [vmem:[%s159_s30 + $0x40] sm:$0xff] %v229_v8  ;;  %v233_v10 = vld [vmem:[%s162_s29 + $0xa0] sm:$0xff]  ;;  %v235_v11 = vld [vmem:[%s162_s29 + $0xb0] sm:$0xff]  ;;  %232 = vst [vmem:[%s159_s30 + $0x48] sm:$0xff] %v231_v9 }
  0x18   : > { %234 = vst [vmem:[%s159_s30 + $0x50] sm:$0xff] %v233_v10  ;;  %236 = vst [vmem:[%s159_s30 + $0x58] sm:$0xff] %v235_v11 }
  0x19 PF: > { %p565_p7 = scmp.ge.s32.totalorder %s663_s17, 1  ;;  %p241_p8 = scmp.lt.s32.totalorder %s663_s17, 3 }
  0x1b   : > { %p242_p9 = pnand %p565_p7, %p241_p8 }
  0x1c   : > { %s248_s5 = sand.u32 (!%p242_p9), 1, %s655_s15  }
  0x1d   : > { %245 = sbr.rel (%p242_p9) target bundleno = 276 (0x114), region = 70  ;;  %s566_s25 = sshll.u32 (!%p242_p9), %s248_s5, 4 }
  0x1e   : > { %s594_s6 = smul.u32 (!%p242_p9), 96, %s248_s5  ;;  %s271_s26 = scalar_lea.vmem (!%p242_p9), [#allocation3], %s566_s25 }
  0x20   : > { %s250_s20 = scalar_lea.vmem (!%p242_p9), [#allocation2], %s594_s6 }
  0x22   : > { %v665_v12 = vmov 0   ;;  %v289_v13 = vld [vmem:[%s772_s2] sm:$0xff]  ;;  %vm368_vm0 = vcmask 1044480   ;;  %v290_v15 = vld [vmem:[%s772_s2 + $0x8] sm:$0xff]  ;;  %v628_v22 = vld [vmem:[%s250_s20 + $0x34] ss:$8 sps:$4 sm:$0xff]  }
  0x23   : > { %407 = vmatprep.mubr.bf16.mxu0 %v665_v12  ;;  %620 = vset.pattern.permute.xlu0 %v665_v12  ;;  %v422_v14 = vld [vmem:[%s773_s3] sm:$0xff]  ;;  %v423_v16 = vld [vmem:[%s773_s3 + $0x8] sm:$0xff]  ;;  %v622_v17 = vld [vmem:[%s250_s20 + $0x54] ss:$8 sps:$4 sm:$0x1f]   ;;  %vm364_vm1 = vcmask 736256  }
  0x24   : > { %293 = vperm.xlu0 %620, %v289_v13   ;;  %621 = vset.pattern.permute.xlu1 %v665_v12  ;;  %v624_v18 = vld [vmem:[%s250_s20 + $0x50] ss:$8 sps:$4 sm:$0x1f]   ;;  %v625_v19 = vld [vmem:[%s250_s20 + $0x44] ss:$8 sps:$4 sm:$0xff]   ;;  %s592_s15 = sshll.u32 (%p721_p5), %s559_s18, 3 }
  0x25   : > { %426 = vperm.xlu1 %621, %v422_v14   ;;  %580 = vmatprep.subr.msk.bf16.mxu0 %vm368_vm0, %v622_v17  ;;  %v370_v20 = vsel %vm368_vm0, %v624_v18, 0  ;;  %v627_v21 = vld [vmem:[%s250_s20 + $0x40] ss:$8 sps:$4 sm:$0xff]   ;;  %v630_v23 = vld [vmem:[%s250_s20 + $0x30] ss:$8 sps:$4 sm:$0xff]   ;;  %s465_s29 = scalar_lea.vmem (%p721_p5), %s774_s4, %s592_s15 }
  0x26   : > { %380 = vmatpush1.bf16.msra.mxu0 %v370_v20  ;;  %v631_v24 = vld [vmem:[%s250_s20 + $0x24] ss:$8 sps:$4 sm:$0xff]   ;;  %v633_v25 = vld [vmem:[%s250_s20 + $0x20] ss:$8 sps:$4 sm:$0xff]   ;;  %v634_v26 = vld [vmem:[%s250_s20 + $0x14] ss:$8 sps:$4 sm:$0xff]  }
  0x27   : > { %381 = vmatprep.subr.bf16.mxu0 %v625_v19  ;;  %v636_v27 = vld [vmem:[%s250_s20 + $0x10] ss:$8 sps:$4 sm:$0xff]   ;;  %v637_v28 = vld [vmem:[%s250_s20 + $0x4] ss:$8 sps:$4 sm:$0xff]   ;;  %v639_v29 = vld [vmem:[%s250_s20] ss:$8 sps:$4 sm:$0xff]  }
  0x28   : > { %298 = vperm.xlu0 %620, %v290_v15   ;;  %v640_v30 = vld [vmem:[%s770_s0] sm:$0xff]  }
  0x29   : > { %431 = vperm.xlu1 %621, %v423_v16  }
  0x2a   : > { %382 = vmatpush1.bf16.msra.mxu0 %v627_v21 }
  0x2b   : > { %383 = vmatprep.subr.bf16.mxu0 %v628_v22 }
  0x2e   : > { %384 = vmatpush1.bf16.msra.mxu0 %v630_v23 }
  0x2f   : > { %385 = vmatprep.subr.bf16.mxu0 %v631_v24 }
  0x32   : > { %386 = vmatpush1.bf16.msra.mxu0 %v633_v25 }
  0x33   : > { %387 = vmatprep.subr.bf16.mxu0 %v634_v26 }
  0x36   : > { %388 = vmatpush1.bf16.msra.mxu0 %v636_v27 }
  0x37   : > { %389 = vmatprep.subr.bf16.mxu0 %v637_v28 }
  0x3a   : > { %390 = vmatpush1.bf16.msra.mxu0 %v639_v29 }
  0x3d   : > { %581 = vmatmul.mubr.msk.bf16.vlgmr.msra.gmra.mxu0 %vm364_vm1, %v640_v30 }
  0x9f   : > { %v294_v31 = vpop.permute.xlu0 %293 }
  0xa0   : > { %v427_v32 = vpop.permute.xlu1 %426 }
  0xa3   : > { %v299_v38 = vpop.permute.xlu0 %298 }
  0xa4   : > { %v432_v42 = vpop.permute.xlu1 %431 }
  0xfd   : > { %v409_v33 = vpop.f32.mrf.mxu0 }
  0xfe   : > { %v410_v34 = vadd.f32 %v409_v33, %v294_v31 }
  0xff   : > { %v411_v35 = vpop.f32.mrf.mxu0 }
 0x100   : > { %v434_v36 = vmul.f32 %v427_v32, %v410_v34  ;;  %v412_v37 = vadd.f32 %v411_v35, %v294_v31  ;;  %vm418_vm2 = vcmp.gt.f32.partialorder %v410_v34, 0.0 }
 0x101   : > { %v413_v39 = vpop.f32.mrf.mxu0 }
 0x102   : > { %vm419_vm3 = vcmp.gt.f32.partialorder %v412_v37, 0.0  ;;  %v435_v40 = vmul.f32 %v427_v32, %v412_v37  ;;  %v414_v41 = vadd.f32 %v413_v39, %v299_v38  ;;  %v438_v44 = vsel %vm418_vm2, %v410_v34, %v434_v36 }
 0x103   : > { %v415_v43 = vpop.f32.mrf.mxu0 }
 0x104   : > { %v439_v45 = vsel %vm419_vm3, %v412_v37, %v435_v40  ;;  %v436_v46 = vmul.f32 %v432_v42, %v414_v41  ;;  %v416_v47 = vadd.f32 %v415_v43, %v299_v38  ;;  %vm420_vm4 = vcmp.gt.f32.partialorder %v414_v41, 0.0 }
 0x105   : > { %v590_v48 = vpack.c.bf16 %v439_v45, %v438_v44 }
 0x106   : > { %vm421_vm5 = vcmp.gt.f32.partialorder %v416_v47, 0.0  ;;  %v437_v49 = vmul.f32 %v432_v42, %v416_v47  ;;  %v440_v50 = vsel %vm420_vm4, %v414_v41, %v436_v46 }
 0x107   : > { %454 = vst [vmem:[%s271_s26] sm:$0xff] %v590_v48  ;;  %462 = sbr.rel (!%p721_p5) target bundleno = 276 (0x114), region = 78 }
 0x108   : > { %v441_v51 = vsel %vm421_vm5, %v416_v47, %v437_v49 }
 0x109   : > { %v591_v52 = vpack.c.bf16 %v441_v51, %v440_v50 }
 0x10b   : > { %455 = vst [vmem:[%s271_s26 + $0x8] sm:$0xff] %v591_v52 }
 0x10e   : > { %v496_v53 = vld [vmem:[%s271_s26] sm:$0xff] }
 0x10f   : > { %497 = vst [vmem:[%s465_s29] sm:$0xff] %v496_v53 }
 0x112   : > { %v498_v54 = vld [vmem:[%s271_s26 + $0x8] sm:$0xff] }
 0x113   : > { %499 = vst [vmem:[%s465_s29 + $0x10] sm:$0xff] %v498_v54 }
 0x114 PF: > { %p11_p10 = scmp.ge.s32.totalorder %s708_s19, 4   ;;  %s776_s15 = smov %s659_s16 }
 0x115   : > { %s777_s16 = smov %s719_s22  ;;  %s778_s17 = smov %s708_s19 }
 0x116   :  { %13 = sbr.rel (!%p11_p10) target bundleno = 2 (0x2), region = 147 }

// kernel: pnet_forward.5
= control target key start
LH: loop header
LB: loop body
LE: loop exit
PB: predicated region body
PF: predicated region fallthrough
CT: control target
= control target key end

     0   :  { %s850_s21 = smov 0   ;;  %s852_s22 = smov 0   ;;  %s999_s0 = inlined_call_operand.vmem [shape: bf16[32,144], index: 0, kind: input, shape index: {}]   ;;  %s1000_s1 = inlined_call_operand.vmem [shape: bf16[144,256], index: 1, kind: input, shape index: {}]   ;;  %s1001_s2 = inlined_call_operand.vmem [shape: f32[32,1], index: 2, kind: input, shape index: {}]   ;;  %s1002_s3 = inlined_call_operand.vmem [shape: f32[32,1], index: 3, kind: input, shape index: {}]   ;;  %s1003_s4 = inlined_call_operand.vmem [shape: bf16[8,32], index: 4, kind: input, shape index: {}]   ;;  %s1004_s5 = inlined_call_operand.vmem [shape: f32[8,1], index: 5, kind: input, shape index: {}]   ;;  %s1005_s6 = inlined_call_operand.vmem [shape: f32[8,256], index: 6, kind: output, shape index: {}]  }
   0x1   :  { %s854_s23 = smov 0  }
   0x2 LB: > { %s702_s24 = sadd.s32 4294967295, %s810_s23   ;;  %s867_s25 = sadd.s32 1, %s810_s23   ;;  %s810_s23 = sphi %s854_s23, %s1008_s23   ;;  %s806_s22 = sphi %s852_s22, %s1007_s22   ;;  %s802_s21 = sphi %s850_s21, %s1006_s21  }
   0x3   : > { %s41_s26 = ssub.s32 %s810_s23, %s867_s25  ;;  %s44_s27 = sadd.s32 1, %s806_s22 }
   0x4   : > { %p42_p0 = scmp.eq.s32.totalorder %s41_s26, 0  ;;  %p51_p1 = scmp.ne.s32.totalorder %s806_s22, %s802_s21 }
   0x5   : > { %p52_p2 = scmp.eq.s32.totalorder %s810_s23, 0  ;;  %p705_p4 = scmp.ge.s32.totalorder %s810_s23, 2 }
   0x6   : > { %s876_s28 = scalar_select %p42_p0, %s806_s22, %s44_s27  }
   0x7   : > { %p53_p3 = por %p52_p2, %p51_p1  ;;  %202 = sbr.rel (%p705_p4) target bundleno = 28 (0x1c), region = 36 }
   0xc   : > { %205 = sbr.rel (!%p53_p3) target bundleno = 28 (0x1c), region = 40  ;;  %s207_s29 = sand.u32 (%p53_p3), 1, %s806_s22  }
   0xd   : > { %s706_s30 = sshll.u32 (%p53_p3), %s810_s23, 2  ;;  %s738_s7 = smul.u32 (%p53_p3), 72, %s207_s29 }
   0xe   : > { %s884_s10 = scalar_lea.vmem (%p53_p3), %s1000_s1, %s706_s30 }
   0xf   : > { %v228_v0 = vld [vmem:[%s884_s10] sm:$0xf] (%p53_p3)  ;;  %v230_v1 = vld [vmem:[%s884_s10 + $0x8] sm:$0xf] (%p53_p3)  ;;  %v232_v2 = vld [vmem:[%s884_s10 + $0x10] sm:$0xf] (%p53_p3) }
  0x10   : > { %v234_v3 = vld [vmem:[%s884_s10 + $0x18] sm:$0xf] (%p53_p3)  ;;  %v236_v4 = vld [vmem:[%s884_s10 + $0x20] sm:$0xf] (%p53_p3)  ;;  %s891_s11 = scalar_lea.vmem (%p53_p3), [#allocation2], %s738_s7 }
  0x11   : > { %229 = vst [vmem:[%s891_s11] sm:$0xf] %v228_v0  ;;  %231 = vst [vmem:[%s891_s11 + $0x4] sm:$0xf] %v230_v1  ;;  %v238_v5 = vld [vmem:[%s884_s10 + $0x28] sm:$0xf] }
  0x12   : > { %233 = vst [vmem:[%s891_s11 + $0x8] sm:$0xf] %v232_v2  ;;  %235 = vst [vmem:[%s891_s11 + $0xc] sm:$0xf] %v234_v3  ;;  %v240_v6 = vld [vmem:[%s884_s10 + $0x30] sm:$0xf] }
  0x13   : > { %237 = vst [vmem:[%s891_s11 + $0x10] sm:$0xf] %v236_v4  ;;  %v242_v7 = vld [vmem:[%s884_s10 + $0x38] sm:$0xf]  ;;  %239 = vst [vmem:[%s891_s11 + $0x14] sm:$0xf] %v238_v5 }
  0x14   : > { %241 = vst [vmem:[%s891_s11 + $0x18] sm:$0xf] %v240_v6  ;;  %243 = vst [vmem:[%s891_s11 + $0x1c] sm:$0xf] %v242_v7  ;;  %v244_v8 = vld [vmem:[%s884_s10 + $0x40] sm:$0xf] }
  0x15   : > { %v246_v9 = vld [vmem:[%s884_s10 + $0x48] sm:$0xf]  ;;  %v248_v10 = vld [vmem:[%s884_s10 + $0x50] sm:$0xf]  ;;  %245 = vst [vmem:[%s891_s11 + $0x20] sm:$0xf] %v244_v8 }
  0x16   : > { %247 = vst [vmem:[%s891_s11 + $0x24] sm:$0xf] %v246_v9  ;;  %249 = vst [vmem:[%s891_s11 + $0x28] sm:$0xf] %v248_v10  ;;  %v250_v11 = vld [vmem:[%s884_s10 + $0x58] sm:$0xf] }
  0x17   : > { %v252_v12 = vld [vmem:[%s884_s10 + $0x60] sm:$0xf]  ;;  %v254_v13 = vld [vmem:[%s884_s10 + $0x68] sm:$0xf]  ;;  %251 = vst [vmem:[%s891_s11 + $0x2c] sm:$0xf] %v250_v11 }
  0x18   : > { %253 = vst [vmem:[%s891_s11 + $0x30] sm:$0xf] %v252_v12  ;;  %255 = vst [vmem:[%s891_s11 + $0x34] sm:$0xf] %v254_v13  ;;  %v256_v14 = vld [vmem:[%s884_s10 + $0x70] sm:$0xf] }
  0x19   : > { %v258_v15 = vld [vmem:[%s884_s10 + $0x78] sm:$0xf]  ;;  %v260_v16 = vld [vmem:[%s884_s10 + $0x80] sm:$0xf]  ;;  %257 = vst [vmem:[%s891_s11 + $0x38] sm:$0xf] %v256_v14 }
  0x1a   : > { %259 = vst [vmem:[%s891_s11 + $0x3c] sm:$0xf] %v258_v15  ;;  %261 = vst [vmem:[%s891_s11 + $0x40] sm:$0xf] %v260_v16  ;;  %v262_v17 = vld [vmem:[%s884_s10 + $0x88] sm:$0xf] }
  0x1b   : > { %263 = vst [vmem:[%s891_s11 + $0x44] sm:$0xf] %v262_v17 }
  0x1c PF: > { %p707_p5 = scmp.ge.s32.totalorder %s810_s23, 1  ;;  %p322_p6 = scmp.lt.s32.totalorder %s810_s23, 3 }
  0x1e   : > { %p323_p7 = pnand %p707_p5, %p322_p6 }
  0x1f   : > { %s329_s12 = sand.u32 (!%p323_p7), 1, %s802_s21   ;;  %p357_p8 = scmp.lt.s32.totalorder (!%p323_p7), %s702_s24, 1 }
  0x20   : > { %326 = sbr.rel (%p323_p7) target bundleno = 531 (0x213), region = 81 }
  0x21   : > { %s739_s13 = smul.u32 (!%p323_p7), 72, %s329_s12 }
  0x23   : > { %s940_s26 = scalar_lea.vmem (!%p323_p7), [#allocation2], %s739_s13 }
  0x25   : > { %v812_v18 = vmov 0   ;;  %v780_v19 = vld [vmem:[%s999_s0 + $0x4] ss:$8 sps:$4 sm:$0xff]   ;;  %vm480_vm0 = vcmask 130048   ;;  %v386_v20 = vld [vmem:[%s1001_s2 + $0x10] sm:$0xff]  ;;  %v387_v22 = vld [vmem:[%s1001_s2 + $0x18] sm:$0xff] }
  0x26   : > { %487 = vmatprep.subr.bf16.mxu0 %v812_v18  ;;  %767 = vset.pattern.permute.xlu0 %v812_v18  ;;  %v542_v21 = vld [vmem:[%s1002_s3 + $0x10] sm:$0xff]  ;;  %v769_v23 = vld [vmem:[%s940_s26 + $0x38] sm:$0xff]   ;;  %v385_v28 = vld [vmem:[%s1001_s2 + $0x8] sm:$0xff]  ;;  %v813_v41 = vmov 0.0   ;;  %vm814_vm1 = vmmov 0   ;;  %vm581_vm6 = vcmask 261120  }
  0x27   : > { %768 = vset.pattern.permute.xlu1 %v812_v18  ;;  %722 = vmatprep.mubr.msk.bf16.mxu0 %vm480_vm0, %v780_v19  ;;  %v543_v24 = vld [vmem:[%s1002_s3 + $0x18] sm:$0xff]  ;;  %v771_v26 = vld [vmem:[%s940_s26 + $0x28] sm:$0xff]   ;;  %v384_v27 = vld [vmem:[%s1001_s2] sm:$0xff]  ;;  %s1010_s24 = smov (!%p357_p8, %s702_s24), 1  ;;  %vm638_vm7 = vcmask 1040384   ;;  %vm640_vm8 = vcmask 1041408  }
  0x28   : > { %400 = vperm.xlu0 %767, %v386_v20   ;;  %556 = vperm.xlu1 %768, %v542_v21   ;;  %v770_v25 = vld [vmem:[%s940_s26 + $0x30] sm:$0xff]   ;;  %v772_v29 = vld [vmem:[%s940_s26 + $0x20] sm:$0xff]   ;;  %v773_v32 = vld [vmem:[%s940_s26 + $0x18] sm:$0xff]   ;;  %s708_s29 = sshll.u32 %s1010_s24, 3 }
  0x29   : > { %488 = vmatpush1.bf16.msra.mxu0 %v769_v23  ;;  %v540_v30 = vld [vmem:[%s1002_s3] sm:$0xff]  ;;  %v541_v31 = vld [vmem:[%s1002_s3 + $0x8] sm:$0xff]  ;;  %v774_v34 = vld [vmem:[%s940_s26 + $0x10] sm:$0xff]   ;;  %730 = vmatprep.subr.bf16.mxu1 %v813_v41  ;;  %s360_s8 = scalar_lea.vmem %s1005_s6, %s708_s29 }
  0x2a   : > { %489 = vmatprep.subr.bf16.mxu0 %v812_v18  ;;  %v575_v33 = vld [vmem:[%s1004_s5] sm:$0xff]  ;;  %v775_v35 = vld [vmem:[%s940_s26 + $0x8] sm:$0xff]   ;;  %734 = vmatprep.mubr.msk.bf16.mxu1 %vm814_vm1, %v813_v41 }
  0x2b   : > { %v776_v36 = vld [vmem:[%s940_s26] sm:$0xff]   ;;  %v781_v39 = vld [vmem:[%s999_s0 + $0x14] ss:$8 sps:$4 sm:$0xff]   ;;  %v783_v40 = vld [vmem:[%s999_s0 + $0x10] ss:$8 sps:$4 sm:$0xff]  }
  0x2c   : > { %405 = vperm.xlu0 %767, %v387_v22   ;;  %561 = vperm.xlu1 %768, %v543_v24   ;;  %v777_v37 = vld [vmem:[%s940_s26 + $0x40] sm:$0xff]  }
  0x2d   : > { %490 = vmatpush1.bf16.msra.mxu0 %v770_v25  ;;  %v778_v38 = vld [vmem:[%s999_s0] ss:$8 sps:$4 sm:$0xff]  }
  0x2e   : > { %491 = vmatprep.subr.bf16.mxu0 %v812_v18  ;;  %v572_v8 = vld [vmem:[%s1003_s4] sm:$0xf] }
  0x30   : > { %390 = vperm.xlu0 %767, %v384_v27   ;;  %395 = vperm.xlu1 %768, %v385_v28  }
  0x31   : > { %492 = vmatpush1.bf16.msra.mxu0 %v771_v26 }
  0x32   : > { %493 = vmatprep.subr.bf16.mxu0 %v812_v18 }
  0x34   : > { %546 = vperm.xlu0 %767, %v540_v30   ;;  %551 = vperm.xlu1 %768, %v541_v31  }
  0x35   : > { %494 = vmatpush1.bf16.msra.mxu0 %v772_v29 }
  0x36   : > { %495 = vmatprep.subr.bf16.mxu0 %v812_v18 }
  0x38   : > { %578 = vperm.xlu0 %767, %v575_v33  }
  0x39   : > { %496 = vmatpush1.bf16.msra.mxu0 %v773_v32 }
  0x3a   : > { %497 = vmatprep.subr.bf16.mxu0 %v812_v18 }
  0x3d   : > { %498 = vmatpush1.bf16.msra.mxu0 %v774_v34 }
  0x3e   : > { %499 = vmatprep.subr.bf16.mxu0 %v812_v18 }
  0x41   : > { %500 = vmatpush1.bf16.msra.mxu0 %v775_v35 }
  0x42   : > { %501 = vmatprep.subr.bf16.mxu0 %v812_v18 }
  0x45   : > { %502 = vmatpush1.bf16.msra.mxu0 %v776_v36 }
  0x46   : > { %517 = vmatprep.subr.bf16.mxu0 %v812_v18 }
  0x49   : > { %518 = vmatpush2.bf16.msra.mxu0 %v777_v37 }
  0x4c   : > { %520 = vmatmul.mubr.bf16.vlgmr.msra.gmra.mxu0 %v778_v38 }
  0x4d   : > { %723 = vmatprep.mubr.msk.bf16.mxu0 %vm480_vm0, %v781_v39 }
  0x54   : > { %528 = vmatmul.mubr.bf16.gmra.mxu0 %v783_v40 }
  0xa3   : > { %v557_v42 = vpop.permute.xlu1 %556  ;;  %v401_v43 = vpop.permute.xlu0 %400 }
  0xa7   : > { %v562_v44 = vpop.permute.xlu1 %561  ;;  %v406_v46 = vpop.permute.xlu0 %405 }
  0xab   : > { %v396_v49 = vpop.permute.xlu1 %395  ;;  %v391_v51 = vpop.permute.xlu0 %390 }
  0xaf   : > { %v552_v56 = vpop.permute.xlu1 %551  ;;  %v547_v61 = vpop.permute.xlu0 %546 }
  0xb3   : > { %v579_v9 = vpop.permute.xlu0 %578 }
 0x10c   : > { %v521_v45 = vpop.f32.mrf.mxu0 }
 0x10d   : > { %v522_v58 = vadd.f32 %v521_v45, %v391_v51 }
 0x10e   : > { %v523_v47 = vpop.f32.mrf.mxu0 }
 0x10f   : > { %v564_v1 = vmul.f32 %v547_v61, %v522_v58  ;;  %vm536_vm5 = vcmp.gt.f32.partialorder %v522_v58, 0.0 }
 0x110   : > { %v524_v48 = vpop.f32.mrf.mxu0 }
 0x111   : > { %v525_v55 = vadd.f32 %v524_v48, %v396_v49  ;;  %v568_v6 = vsel %vm536_vm5, %v522_v58, %v564_v1 }
 0x112   : > { %v526_v50 = vpop.f32.mrf.mxu0 }
 0x113   : > { %v565_v63 = vmul.f32 %v552_v56, %v525_v55  ;;  %vm537_vm4 = vcmp.gt.f32.partialorder %v525_v55, 0.0 }
 0x114   : > { %v529_v52 = vpop.f32.mrf.mxu0 }
 0x115   : > { %v530_v53 = vadd.f32 %v529_v52, %v401_v43  ;;  %v569_v5 = vsel %vm537_vm4, %v525_v55, %v565_v63 }
 0x116   : > { %v531_v54 = vpop.f32.mrf.mxu0  ;;  %v573_v7 = vpack.c.bf16 %v569_v5, %v568_v6 }
 0x117   : > { %v566_v59 = vmul.f32 %v557_v42, %v530_v53  ;;  %vm538_vm2 = vcmp.gt.f32.partialorder %v530_v53, 0.0 }
 0x118   : > { %v532_v57 = vpop.f32.mrf.mxu0 }
 0x119   : > { %v533_v60 = vadd.f32 %v532_v57, %v406_v46  ;;  %v570_v2 = vsel %vm538_vm2, %v530_v53, %v566_v59 }
 0x11a   : > { %v534_v62 = vpop.f32.mrf.mxu0 }
 0x11b   : > { %v567_v0 = vmul.f32 %v562_v44, %v533_v60  ;;  %vm539_vm3 = vcmp.gt.f32.partialorder %v533_v60, 0.0 }
 0x11d   : > { %v571_v3 = vsel %vm539_vm3, %v533_v60, %v567_v0 }
 0x11e   : > { %v574_v4 = vpack.c.bf16 %v571_v3, %v570_v2 }
 0x120   : > { %731 = vmatpush3.bf16.msra.mxu1 %v574_v4 }
 0x121   : > { %732 = vmatprep.subr.bf16.mxu1 %v813_v41 }
 0x124   : > { %733 = vmatpush3.bf16.msra.mxu1 %v573_v7 }
 0x127   : > { %735 = vmatmul.mubr.msk.bf16.vlgmr.msra.gmra.mxu1 %vm581_vm6, %v572_v8 }
 0x1e7   : > { %v619_v10 = vpop.f32.mrf.mxu1 }
 0x1e8   : > { %v620_v11 = vadd.f32 %v619_v10, %v579_v9 }
 0x1e9   : > { %v736_v12 = vpop.f32.mrf.mxu1 }
 0x1ea   : > { %v626_v13 = vrot.slane %v620_v11, 1 }
 0x1eb   : > { %v622_v14 = vpop.f32.mrf.mxu1 }
 0x1ec   : > { %v628_v15 = vsub.f32 %v620_v11, %v626_v13 }
 0x1ed   : > { %v737_v16 = vpop.f32.mrf.mxu1 }
 0x1ee   : > { %v629_v17 = vmul.f32 1.442695, %v628_v15 }
 0x1f0   : > { %784 = vpow2.f32 %v629_v17 }
 0x1fd   : > { %v785_v18 = vpop.eup %784 }
 0x1fe   : > { %v631_v19 = vadd.f32 1.0, %v785_v18 }
 0x200   : > { %786 = vrcp.f32 %v631_v19 }
 0x20d   : > { %v787_v20 = vpop.eup %786 }
 0x20e   : > { %v634_v21 = vsub.f32 1.0, %v787_v20  ;;  %v636_v22 = vrot.slane %v787_v20, 7 }
 0x210   : > { %v639_v23 = vsel %vm638_vm7, %v634_v21, %v636_v22 }
 0x211   : > { %v641_v24 = vsel %vm640_vm8, %v639_v23, %v620_v11 }
 0x212   : > { %642 = vst [vmem:[%s360_s8] sm:$0xff] %v641_v24 }
 0x213 PF: > { %p13_p9 = scmp.ge.s32.totalorder %s867_s25, 4   ;;  %s1006_s21 = smov %s806_s22 }
 0x214   : > { %s1007_s22 = smov %s876_s28  ;;  %s1008_s23 = smov %s867_s25 }
 0x215   :  { %15 = sbr.rel (!%p13_p9) target bundleno = 2 (0x2), region = 120 }

</bundles_post_ra>
